<compile_context>
chip_gen: v7x
topology: tpu7x:2x2x1
jax: 0.10.0
libtpu: 0.0.40
codegen_flags: <defaults>
</compile_context>

<pallas_src>
import functools

import jax
import jax.numpy as jnp
from jax.experimental import pallas as pl
from jax.experimental.pallas import tpu as pltpu

HIDDEN = 64
OUT_DIM = 32


# ----------------------------- Pallas kernel --------------------------------
def mlp_kernel(x_ref, w1_ref, b1_ref, w2_ref, b2_ref, w3_ref, b3_ref, o_ref):
    """One batch tile of: Linear -> ReLU -> Linear -> ReLU -> Linear."""
    x = x_ref[...].astype(jnp.bfloat16)          # f32 -> bf16 cast folded in-kernel
    h1 = jnp.dot(x, w1_ref[...], preferred_element_type=jnp.float32) + b1_ref[...]
    h1 = jnp.maximum(h1, 0.0)                    # f32 VPU epilogue (v5e-safe)
    h2 = jnp.dot(h1.astype(jnp.bfloat16), w2_ref[...],
                 preferred_element_type=jnp.float32) + b2_ref[...]
    h2 = jnp.maximum(h2, 0.0)
    o = jnp.dot(h2.astype(jnp.bfloat16), w3_ref[...],
                preferred_element_type=jnp.float32) + b3_ref[...]
    o_ref[...] = o.astype(o_ref.dtype)           # (tb, 32), no padded columns


def _round_up(n, m):
    return ((n + m - 1) // m) * m


@functools.partial(jax.jit, static_argnames=("tile_b",))
def mlp_forward(x, kparams, *, tile_b=2048):
    """x: (B, D_in) float32.  kparams: kernel-ready params (bf16 weights, f32 biases)."""
    w1, b1 = kparams["w1"], kparams["b1"]
    w2, b2 = kparams["w2"], kparams["b2"]
    w3, b3 = kparams["w3"], kparams["b3"]

    B, d_in = x.shape
    d_h = w1.shape[1]
    d_out = w3.shape[1]

    # Batch tile: as large as possible (amortizes ~600-cycle per-step pipeline
    # overhead), but split into >= 2 even tiles when the batch allows so the
    # "parallel" axis feeds both TensorCores on v7x.  Multiple of 16 rows.
    tb = min(tile_b, _round_up(B, 16))
    if B >= 32 and pl.cdiv(B, tb) < 2:
        tb = _round_up(pl.cdiv(B, 2), 16)
    b_pad = _round_up(B, tb)
    if b_pad != B:                 # only triggers for ragged batches
        x = jnp.pad(x, ((0, b_pad - B), (0, 0)))

    grid = (pl.cdiv(b_pad, tb),)
    const2d = lambda arr: pl.BlockSpec(arr.shape, lambda i: (0, 0))  # VMEM-resident

    flops = 2 * b_pad * (d_in * d_h + d_h * d_h + d_h * d_out)
    bytes_accessed = (
        b_pad * d_in * 4                                  # x in  (f32)
        + b_pad * d_out * 4                               # out   (f32)
        + (d_in * d_h + d_h * d_h + d_h * d_out) * 2      # bf16 weights
        + (d_h + d_h + d_out) * 4                         # f32 biases
    )

    out = pl.pallas_call(
        mlp_kernel,
        out_shape=jax.ShapeDtypeStruct((b_pad, d_out), jnp.float32),
        grid=grid,
        in_specs=[
            pl.BlockSpec((tb, d_in), lambda i: (i, 0)),   # x: streamed per tile
            const2d(w1), const2d(b1),
            const2d(w2), const2d(b2),
            const2d(w3), const2d(b3),
        ],
        out_specs=pl.BlockSpec((tb, d_out), lambda i: (i, 0)),
        compiler_params=pltpu.CompilerParams(
            dimension_semantics=("parallel",),            # dual-TC split on v7x
        ),
        cost_estimate=pl.CostEstimate(
            flops=flops, transcendentals=0, bytes_accessed=bytes_accessed),
    )(x, w1, b1, w2, b2, w3, b3)

    if b_pad != B:
        out = out[:B]
    return out


# ------------------------- deterministic parameters --------------------------
def orthogonal_init(key, out_features, in_features, gain):
    """Deterministic orthogonal init (torch.nn.init.orthogonal_ semantics)."""
    rows, cols = out_features, in_features
    flat = jax.random.normal(key, (max(rows, cols), min(rows, cols)), dtype=jnp.float32)
    q, r = jnp.linalg.qr(flat)
    q = q * jnp.sign(jnp.diag(r))[None, :]   # sign-fix like torch
    if rows < cols:
        q = q.T
    return gain * q[:rows, :cols]


def make_params(input_dim):
    """Canonical f32 params, transposed to (in, out) for x @ W.  Biases are
    zeros exactly as in the PyTorch module (torch.nn.init.zeros_)."""
    gain = 2.0 ** 0.5
    k = jax.random.PRNGKey(42)
    k1, k2, k3 = jax.random.split(k, 3)
    w1 = orthogonal_init(k1, HIDDEN, input_dim, gain)   # (out, in) like torch
    w2 = orthogonal_init(k2, HIDDEN, HIDDEN, gain)
    w3 = orthogonal_init(k3, OUT_DIM, HIDDEN, gain)
    return {
        "w1": jnp.asarray(w1.T), "b1": jnp.zeros((1, HIDDEN), jnp.float32),
        "w2": jnp.asarray(w2.T), "b2": jnp.zeros((1, HIDDEN), jnp.float32),
        "w3": jnp.asarray(w3.T), "b3": jnp.zeros((1, OUT_DIM), jnp.float32),
    }


def prepare_kernel_params(params):
    """bf16 MXU weights, f32 biases; final layer kept unpadded at (64, 32)."""
    return {
        "w1": params["w1"].astype(jnp.bfloat16), "b1": params["b1"],
        "w2": params["w2"].astype(jnp.bfloat16), "b2": params["b2"],
        "w3": params["w3"].astype(jnp.bfloat16), "b3": params["b3"],
    }


# ------------------------------- references ----------------------------------
def reference_forward_f32(x, params):
    h1 = jnp.maximum(x @ params["w1"] + params["b1"], 0.0)
    h2 = jnp.maximum(h1 @ params["w2"] + params["b2"], 0.0)
    return h2 @ params["w3"] + params["b3"]


def reference_forward_bf16(x, kparams):
    """Mirrors the kernel numerics (bf16 operands, f32 accumulation)."""
    xb = x.astype(jnp.bfloat16)
    h1 = jnp.maximum(
        jnp.dot(xb, kparams["w1"], preferred_element_type=jnp.float32) + kparams["b1"], 0.0)
    h2 = jnp.maximum(
        jnp.dot(h1.astype(jnp.bfloat16), kparams["w2"],
                preferred_element_type=jnp.float32) + kparams["b2"], 0.0)
    return jnp.dot(h2.astype(jnp.bfloat16), kparams["w3"],
                   preferred_element_type=jnp.float32) + kparams["b3"]


# ----------------------------------- main ------------------------------------
if __name__ == "__main__":
    input_dim = 16
    batch = 512          # -> 2 even tiles of 256 rows (exercises the parallel grid)

    params = make_params(input_dim)
    kparams = prepare_kernel_params(params)

    key = jax.random.PRNGKey(0)
    state = jax.random.normal(key, (batch, input_dim), dtype=jnp.float32)

    out = mlp_forward(state, kparams)
    out = jax.block_until_ready(out)
    assert out.shape == (batch, OUT_DIM), out.shape
    assert out.dtype == jnp.float32, out.dtype

    # Tight check vs a reference that mirrors the kernel's bf16/f32 numerics.
    ref_bf16 = reference_forward_bf16(state, kparams)
    assert jnp.allclose(out, ref_bf16, atol=1e-3, rtol=1e-3), "mismatch vs bf16-emulated reference"

    # Looser check vs the exact f32 (PyTorch-semantics) forward pass.
    # TODO(synk): for bit-closer torch parity keep layer 1 in f32 (K=16 makes it free).
    ref_f32 = reference_forward_f32(state, params)
    assert jnp.allclose(out, ref_f32, atol=5e-2, rtol=5e-2), "mismatch vs f32 reference"

    print("KERNEL_OK")
</pallas_src>

<mosaic_0001>
module attributes {stable_mosaic.version = 11 : i64} {
  func.func @mlp_kernel(%arg0: i32, %arg1: memref<256x16xf32, #tpu.memory_space<vmem>>, %arg2: memref<16x64xbf16, #tpu.memory_space<vmem>>, %arg3: memref<1x64xf32, #tpu.memory_space<vmem>>, %arg4: memref<64x64xbf16, #tpu.memory_space<vmem>>, %arg5: memref<1x64xf32, #tpu.memory_space<vmem>>, %arg6: memref<64x32xbf16, #tpu.memory_space<vmem>>, %arg7: memref<1x32xf32, #tpu.memory_space<vmem>>, %arg8: memref<256x32xf32, #tpu.memory_space<vmem>>) attributes {dimension_semantics = [#tpu.dimension_semantics<parallel>], iteration_bounds = array<i64: 2>, scalar_prefetch = 0 : i64, scratch_operands = 0 : i64, tpu.core_type = #tpu.core_type<tc>, window_params = [{transform_indices = @transform_0, window_bounds = array<i64: 256, 16>}, {pipeline_mode = #tpu.pipeline_mode<synchronous>, transform_indices = @transform_1, window_bounds = array<i64: 16, 64>}, {pipeline_mode = #tpu.pipeline_mode<synchronous>, transform_indices = @transform_2, window_bounds = array<i64: 1, 64>}, {pipeline_mode = #tpu.pipeline_mode<synchronous>, transform_indices = @transform_3, window_bounds = array<i64: 64, 64>}, {pipeline_mode = #tpu.pipeline_mode<synchronous>, transform_indices = @transform_4, window_bounds = array<i64: 1, 64>}, {pipeline_mode = #tpu.pipeline_mode<synchronous>, transform_indices = @transform_5, window_bounds = array<i64: 64, 32>}, {pipeline_mode = #tpu.pipeline_mode<synchronous>, transform_indices = @transform_6, window_bounds = array<i64: 1, 32>}, {transform_indices = @transform_7, window_bounds = array<i64: 256, 32>}]} {
    %c0 = arith.constant 0 : index
    %c0_0 = arith.constant 0 : index
    %0 = vector.load %arg1[%c0, %c0_0] : memref<256x16xf32, #tpu.memory_space<vmem>>, vector<256x16xf32>
    %1 = arith.truncf %0 : vector<256x16xf32> to vector<256x16xbf16>
    %c0_1 = arith.constant 0 : index
    %c0_2 = arith.constant 0 : index
    %2 = vector.load %arg2[%c0_1, %c0_2] : memref<16x64xbf16, #tpu.memory_space<vmem>>, vector<16x64xbf16>
    %cst = arith.constant dense<0.000000e+00> : vector<256x64xf32>
    %3 = tpu.matmul %1, %2, %cst {dimension_numbers = #tpu.dot_dimension_numbers<[1], [0], [0], [1], [0, 0, 1, 1], [], []>} : vector<256x16xbf16>, vector<16x64xbf16>, vector<256x64xf32> -> vector<256x64xf32>
    %c0_3 = arith.constant 0 : index
    %c0_4 = arith.constant 0 : index
    %4 = vector.load %arg3[%c0_3, %c0_4] : memref<1x64xf32, #tpu.memory_space<vmem>>, vector<1x64xf32>
    %5 = vector.broadcast %4 : vector<1x64xf32> to vector<256x64xf32>
    %6 = arith.addf %3, %5 : vector<256x64xf32>
    %cst_5 = arith.constant 0.000000e+00 : f32
    %7 = vector.broadcast %cst_5 : f32 to vector<256x64xf32>
    %8 = arith.maximumf %6, %7 : vector<256x64xf32>
    %9 = arith.truncf %8 : vector<256x64xf32> to vector<256x64xbf16>
    %c0_6 = arith.constant 0 : index
    %c0_7 = arith.constant 0 : index
    %10 = vector.load %arg4[%c0_6, %c0_7] : memref<64x64xbf16, #tpu.memory_space<vmem>>, vector<64x64xbf16>
    %cst_8 = arith.constant dense<0.000000e+00> : vector<256x64xf32>
    %11 = tpu.matmul %9, %10, %cst_8 {dimension_numbers = #tpu.dot_dimension_numbers<[1], [0], [0], [1], [0, 0, 1, 1], [], []>} : vector<256x64xbf16>, vector<64x64xbf16>, vector<256x64xf32> -> vector<256x64xf32>
    %c0_9 = arith.constant 0 : index
    %c0_10 = arith.constant 0 : index
    %12 = vector.load %arg5[%c0_9, %c0_10] : memref<1x64xf32, #tpu.memory_space<vmem>>, vector<1x64xf32>
    %13 = vector.broadcast %12 : vector<1x64xf32> to vector<256x64xf32>
    %14 = arith.addf %11, %13 : vector<256x64xf32>
    %cst_11 = arith.constant 0.000000e+00 : f32
    %15 = vector.broadcast %cst_11 : f32 to vector<256x64xf32>
    %16 = arith.maximumf %14, %15 : vector<256x64xf32>
    %17 = arith.truncf %16 : vector<256x64xf32> to vector<256x64xbf16>
    %c0_12 = arith.constant 0 : index
    %c0_13 = arith.constant 0 : index
    %18 = vector.load %arg6[%c0_12, %c0_13] : memref<64x32xbf16, #tpu.memory_space<vmem>>, vector<64x32xbf16>
    %cst_14 = arith.constant dense<0.000000e+00> : vector<256x32xf32>
    %19 = tpu.matmul %17, %18, %cst_14 {dimension_numbers = #tpu.dot_dimension_numbers<[1], [0], [0], [1], [0, 0, 1, 1], [], []>} : vector<256x64xbf16>, vector<64x32xbf16>, vector<256x32xf32> -> vector<256x32xf32>
    %c0_15 = arith.constant 0 : index
    %c0_16 = arith.constant 0 : index
    %20 = vector.load %arg7[%c0_15, %c0_16] : memref<1x32xf32, #tpu.memory_space<vmem>>, vector<1x32xf32>
    %21 = vector.broadcast %20 : vector<1x32xf32> to vector<256x32xf32>
    %22 = arith.addf %19, %21 : vector<256x32xf32>
    %c0_17 = arith.constant 0 : index
    %c0_18 = arith.constant 0 : index
    %23 = vector.load %arg8[%c0_17, %c0_18] : memref<256x32xf32, #tpu.memory_space<vmem>>, vector<256x32xf32>
    tpu.vector_store %arg8[%c0_17, %c0_18], %22 {strides = array<i32>} : memref<256x32xf32, #tpu.memory_space<vmem>>, vector<256x32xf32>,
    return
  }
  func.func @transform_0(%arg0: i32) -> (i32, i32) {
    %c0_i32 = arith.constant 0 : i32
    %c0_i32_0 = arith.constant 0 : i32
    return %arg0, %c0_i32 : i32, i32
  }
  func.func @transform_1(%arg0: i32) -> (i32, i32) {
    %c0_i32 = arith.constant 0 : i32
    %c0_i32_0 = arith.constant 0 : i32
    %c0_i32_1 = arith.constant 0 : i32
    return %c0_i32, %c0_i32_0 : i32, i32
  }
  func.func @transform_2(%arg0: i32) -> (i32, i32) {
    %c0_i32 = arith.constant 0 : i32
    %c0_i32_0 = arith.constant 0 : i32
    %c0_i32_1 = arith.constant 0 : i32
    return %c0_i32, %c0_i32_0 : i32, i32
  }
  func.func @transform_3(%arg0: i32) -> (i32, i32) {
    %c0_i32 = arith.constant 0 : i32
    %c0_i32_0 = arith.constant 0 : i32
    %c0_i32_1 = arith.constant 0 : i32
    return %c0_i32, %c0_i32_0 : i32, i32
  }
  func.func @transform_4(%arg0: i32) -> (i32, i32) {
    %c0_i32 = arith.constant 0 : i32
    %c0_i32_0 = arith.constant 0 : i32
    %c0_i32_1 = arith.constant 0 : i32
    return %c0_i32, %c0_i32_0 : i32, i32
  }
  func.func @transform_5(%arg0: i32) -> (i32, i32) {
    %c0_i32 = arith.constant 0 : i32
    %c0_i32_0 = arith.constant 0 : i32
    %c0_i32_1 = arith.constant 0 : i32
    return %c0_i32, %c0_i32_0 : i32, i32
  }
  func.func @transform_6(%arg0: i32) -> (i32, i32) {
    %c0_i32 = arith.constant 0 : i32
    %c0_i32_0 = arith.constant 0 : i32
    %c0_i32_1 = arith.constant 0 : i32
    return %c0_i32, %c0_i32_0 : i32, i32
  }
  func.func @transform_7(%arg0: i32) -> (i32, i32) {
    %c0_i32 = arith.constant 0 : i32
    %c0_i32_0 = arith.constant 0 : i32
    return %arg0, %c0_i32 : i32, i32
  }
}

</mosaic_0001>

<bundles_post_ra>
// kernel: mlp_forward.1
= control target key start
LH: loop header
LB: loop body
LE: loop exit
PB: predicated region body
PF: predicated region fallthrough
CT: control target
= control target key end

     0   :  { %s1547_s24 = smov 0   ;;  %s1863_s0 = inlined_call_operand.vmem [shape: f32[512,16], index: 0, kind: input, shape index: {}]   ;;  %s1864_s1 = inlined_call_operand.vmem [shape: bf16[16,64], index: 1, kind: input, shape index: {}]   ;;  %s1865_s2 = inlined_call_operand.vmem [shape: f32[1,64], index: 2, kind: input, shape index: {}]   ;;  %s1866_s3 = inlined_call_operand.vmem [shape: bf16[64,64], index: 3, kind: input, shape index: {}]   ;;  %s1867_s4 = inlined_call_operand.vmem [shape: f32[1,64], index: 4, kind: input, shape index: {}]   ;;  %s1868_s5 = inlined_call_operand.vmem [shape: bf16[64,32], index: 5, kind: input, shape index: {}]   ;;  %s1869_s6 = inlined_call_operand.vmem [shape: f32[1,32], index: 6, kind: input, shape index: {}]   ;;  %s1870_s7 = inlined_call_operand.vmem [shape: f32[512,32], index: 7, kind: output, shape index: {}]  }
   0x1 LB: > { %s1238_s25 = sadd.s32 4294967295, %s1505_s24   ;;  %p1242_p0 = scmp.ge.s32.totalorder %s1505_s24, 1  ;;  %s1505_s24 = sphi %s1547_s24, %s17_s24  }
   0x2   : > { %p238_p1 = scmp.lt.s32.totalorder %s1505_s24, 3 }
   0x4   : > { %p239_p2 = pnand %p1242_p0, %p238_p1 }
   0x5   : > { %v1490_v0 = vld [vmem:[%s1864_s1] sm:$0xff] (!%p239_p2)   ;;  %s1243_s28 = sshll.u32 (!%p239_p2), %s1238_s25, 5  ;;  %vm346_vm0 = vcmask (!%p239_p2), 130048   ;;  %v1492_v23 = vld [vmem:[%s1866_s3 + $0x8] sm:$0xff] (!%p239_p2)   ;;  %v1493_v28 = vld [vmem:[%s1866_s3 + $0x10] sm:$0xff] (!%p239_p2)   ;;  %vm643_vm1 = vcmask (!%p239_p2), 523264  }
   0x6   : > { %242 = sbr.rel (%p239_p2) target bundleno = 738 (0x2e2), region = 48  ;;  %p271_p3 = scmp.lt.s32.totalorder (!%p239_p2), %s1243_s28, 63  ;;  %1366 = vmatprep.subr.bf16.mxu0 (!%p239_p2), %v1490_v0  ;;  %1480 = vmatprep.subr.bf16.mxu1 (!%p239_p2), %v1490_v0  ;;  %v1491_v1 = vld [vmem:[%s1866_s3] sm:$0xff] (!%p239_p2)   ;;  %v1494_v52 = vld [vmem:[%s1866_s3 + $0x18] sm:$0xff] (!%p239_p2)   ;;  %v1496_v54 = vld [vmem:[%s1868_s5 + $0x8] sm:$0xff] (!%p239_p2)   ;;  %vm1149_vm2 = vcmask (!%p239_p2), 261120  }
   0x7   : > { %1367 = vmatpush3.bf16.msra.mxu0 (!%p239_p2), %v1490_v0  ;;  %1481 = vmatpush3.bf16.msra.mxu1 (!%p239_p2), %v1490_v0  ;;  %v1495_v53 = vld [vmem:[%s1868_s5] sm:$0xff] (!%p239_p2)   ;;  %v1497_v55 = vld [vmem:[%s1868_s5 + $0x10] sm:$0xff] (!%p239_p2)  }
   0x8   : > { %1400 = vmatprep.subr.bf16.mxu1 (!%p239_p2), %v1491_v1  ;;  %1440 = vmatprep.subr.bf16.mxu0 (!%p239_p2), %v1495_v53  ;;  %v1640_v56 = vld [vmem:[%s1865_s2] ss:$0 sm:$0xff] (!%p239_p2) }
   0xd   : > { %s1872_s28 = smov (!%p271_p3, %s1243_s28), 63 }
   0xe   : > { %s1244_s8 = sshll.u32 %s1872_s28, 3 }
   0xf   : > { %s1569_s11 = scalar_lea.vmem %s1863_s0, %s1244_s8  ;;  %s1762_s14 = scalar_lea.vmem %s1870_s7, %s1244_s8 }
  0x10   : > { %v283_v2 = vld [vmem:[%s1569_s11] sm:$0xff]  ;;  %v284_v3 = vld [vmem:[%s1569_s11 + $0x8] sm:$0xff]  ;;  %v285_v4 = vld [vmem:[%s1569_s11 + $0x10] sm:$0xff] }
  0x11   : > { %v315_v5 = vpack.c.bf16 %v284_v3, %v283_v2  ;;  %v286_v6 = vld [vmem:[%s1569_s11 + $0x18] sm:$0xff]  ;;  %v287_v7 = vld [vmem:[%s1569_s11 + $0x20] sm:$0xff]  ;;  %v288_v8 = vld [vmem:[%s1569_s11 + $0x28] sm:$0xff] }
  0x12   : > { %v316_v9 = vpack.c.bf16 %v286_v6, %v285_v4  ;;  %v317_v10 = vpack.c.bf16 %v288_v8, %v287_v7  ;;  %v289_v11 = vld [vmem:[%s1569_s11 + $0x30] sm:$0xff]  ;;  %v290_v12 = vld [vmem:[%s1569_s11 + $0x38] sm:$0xff]  ;;  %v291_v13 = vld [vmem:[%s1569_s11 + $0x40] sm:$0xff] }
  0x13   : > { %1368 = vmatprep.mubr.msk.bf16.mxu0 %vm346_vm0, %v315_v5  ;;  %v292_v14 = vld [vmem:[%s1569_s11 + $0x48] sm:$0xff]  ;;  %v299_v15 = vld [vmem:[%s1569_s11 + $0x80] sm:$0xff]  ;;  %v301_v18 = vld [vmem:[%s1569_s11 + $0x90] sm:$0xff]  ;;  %v318_v24 = vpack.c.bf16 %v290_v12, %v289_v11 }
  0x14   : > { %1369 = vmatmul.mubr.msk.bf16.vlgmr.msra.gmra.mrb[0].mxu0 %vm346_vm0, %v316_v9  ;;  %v300_v16 = vld [vmem:[%s1569_s11 + $0x88] sm:$0xff]  ;;  %v302_v19 = vld [vmem:[%s1569_s11 + $0x98] sm:$0xff]  ;;  %v303_v20 = vld [vmem:[%s1569_s11 + $0xa0] sm:$0xff]  ;;  %v319_v26 = vpack.c.bf16 %v292_v14, %v291_v13 }
  0x15   : > { %1372 = vmatprep.mubr.msk.bf16.mxu0 %vm346_vm0, %v317_v10  ;;  %v323_v17 = vpack.c.bf16 %v300_v16, %v299_v15  ;;  %v324_v21 = vpack.c.bf16 %v302_v19, %v301_v18  ;;  %v304_v22 = vld [vmem:[%s1569_s11 + $0xa8] sm:$0xff]  ;;  %v305_v27 = vld [vmem:[%s1569_s11 + $0xb0] sm:$0xff]  ;;  %v306_v29 = vld [vmem:[%s1569_s11 + $0xb8] sm:$0xff]  ;;  %1441 = vmatpush3.bf16.msra.mxu0 %v1495_v53 }
  0x16   : > { %v325_v25 = vpack.c.bf16 %v304_v22, %v303_v20  ;;  %v307_v30 = vld [vmem:[%s1569_s11 + $0xc0] sm:$0xff]  ;;  %v308_v31 = vld [vmem:[%s1569_s11 + $0xc8] sm:$0xff]  ;;  %v293_v32 = vld [vmem:[%s1569_s11 + $0x50] sm:$0xff]  ;;  %v326_v34 = vpack.c.bf16 %v306_v29, %v305_v27  ;;  %1442 = vmatprep.subr.bf16.mxu0 %v1496_v54 }
  0x17   : > { %1384 = vmatprep.mubr.msk.bf16.mxu1 %vm346_vm0, %v323_v17  ;;  %v294_v33 = vld [vmem:[%s1569_s11 + $0x58] sm:$0xff]  ;;  %v295_v35 = vld [vmem:[%s1569_s11 + $0x60] sm:$0xff]  ;;  %v296_v36 = vld [vmem:[%s1569_s11 + $0x68] sm:$0xff]  ;;  %v327_v37 = vpack.c.bf16 %v308_v31, %v307_v30 }
  0x18   : > { %1385 = vmatmul.mubr.msk.bf16.vlgmr.msra.gmra.mrb[0].mxu1 %vm346_vm0, %v324_v21  ;;  %v320_v38 = vpack.c.bf16 %v294_v33, %v293_v32  ;;  %v321_v39 = vpack.c.bf16 %v296_v36, %v295_v35  ;;  %v309_v40 = vld [vmem:[%s1569_s11 + $0xd0] sm:$0xff]  ;;  %v310_v41 = vld [vmem:[%s1569_s11 + $0xd8] sm:$0xff]  ;;  %v311_v42 = vld [vmem:[%s1569_s11 + $0xe0] sm:$0xff] }
  0x19   : > { %1388 = vmatprep.mubr.msk.bf16.mxu1 %vm346_vm0, %v325_v25  ;;  %1401 = vmatpush3.bf16.msra.mxu1 %v1491_v1  ;;  %v312_v43 = vld [vmem:[%s1569_s11 + $0xe8] sm:$0xff]  ;;  %v297_v44 = vld [vmem:[%s1569_s11 + $0x70] sm:$0xff]  ;;  %v298_v45 = vld [vmem:[%s1569_s11 + $0x78] sm:$0xff]  ;;  %v328_v46 = vpack.c.bf16 %v310_v41, %v309_v40 }
  0x1a   : > { %1402 = vmatprep.subr.bf16.mxu1 %v1492_v23  ;;  %v329_v47 = vpack.c.bf16 %v312_v43, %v311_v42  ;;  %v322_v48 = vpack.c.bf16 %v298_v45, %v297_v44  ;;  %v313_v49 = vld [vmem:[%s1569_s11 + $0xf0] sm:$0xff]  ;;  %v314_v50 = vld [vmem:[%s1569_s11 + $0xf8] sm:$0xff]  ;;  %1443 = vmatpush3.bf16.msra.mxu0 %v1496_v54 }
  0x1b   : > { %v330_v51 = vpack.c.bf16 %v314_v50, %v313_v49  ;;  %1444 = vmatprep.subr.bf16.mxu0 %v1497_v55 }
  0x1c   : > { %1373 = vmatmul.mubr.msk.bf16.gmra.mrb[4].mxu0 %vm346_vm0, %v318_v24 }
  0x1d   : > { %1376 = vmatprep.mubr.msk.bf16.mxu0 %vm346_vm0, %v319_v26  ;;  %1403 = vmatpush3.bf16.msra.mxu1 %v1492_v23 }
  0x1e   : > { %1404 = vmatprep.subr.bf16.mxu1 %v1493_v28  ;;  %1445 = vmatpush3.bf16.msra.mxu0 %v1497_v55 }
  0x20   : > { %1389 = vmatmul.mubr.msk.bf16.gmra.mrb[4].mxu1 %vm346_vm0, %v326_v34 }
  0x21   : > { %1392 = vmatprep.mubr.msk.bf16.mxu1 %vm346_vm0, %v327_v37  ;;  %1405 = vmatpush3.bf16.msra.mxu1 %v1493_v28 }
  0x22   : > { %1406 = vmatprep.subr.bf16.mxu1 %v1494_v52 }
  0x24   : > { %1377 = vmatmul.mubr.msk.bf16.gmra.mrb[8].mxu0 %vm346_vm0, %v320_v38 }
  0x25   : > { %1380 = vmatprep.mubr.msk.bf16.mxu0 %vm346_vm0, %v321_v39  ;;  %1407 = vmatpush3.bf16.msra.mxu1 %v1494_v52 }
  0x28   : > { %1393 = vmatmul.mubr.msk.bf16.gmra.mrb[8].mxu1 %vm346_vm0, %v328_v46 }
  0x29   : > { %1396 = vmatprep.mubr.msk.bf16.mxu1 %vm346_vm0, %v329_v47 }
  0x2c   : > { %1381 = vmatmul.mubr.msk.bf16.gmra.mrb[12].mxu0 %vm346_vm0, %v322_v48 }
  0x30   : > { %1397 = vmatmul.mubr.msk.bf16.gmra.mrb[12].mxu1 %vm346_vm0, %v330_v51 }
  0xe7   : > { %v1370_v57 = vpop.f32.mrb[0].mxu0 }
  0xe8   : > { %v438_v58 = vadd.f32 %v1370_v57, %v1640_v56  ;;  %v429_v59 = vpop.f32.mrb[1].mxu0 }
  0xe9   : > { %v430_v60 = vadd.f32 %v1640_v56, %v429_v59  ;;  %v1371_v61 = vpop.f32.mrb[2].mxu0 }
  0xea   : > { %v441_v62 = vadd.f32 %v1371_v61, %v1640_v56  ;;  %v432_v63 = vpop.f32.mrb[3].mxu0  ;;  %v558_v1 = vmax.f32 %v438_v58, 0.0 }
  0xeb   : > { %v433_v0 = vadd.f32 %v1640_v56, %v432_v63  ;;  %v1386_v3 = vpop.f32.mrb[0].mxu1  ;;  %v556_v4 = vmax.f32 %v430_v60, 0.0 }
  0xec   : > { %v559_v2 = vmax.f32 %v441_v62, 0.0  ;;  %v502_v6 = vadd.f32 %v1386_v3, %v1640_v56  ;;  %v493_v7 = vpop.f32.mrb[1].mxu1 }
  0xed   : > { %v557_v5 = vmax.f32 %v433_v0, 0.0  ;;  %v494_v9 = vadd.f32 %v1640_v56, %v493_v7  ;;  %v1387_v10 = vpop.f32.mrb[2].mxu1 }
  0xee   : > { %v589_v8 = vpack.c.bf16 %v559_v2, %v558_v1  ;;  %v574_v13 = vmax.f32 %v502_v6, 0.0  ;;  %v505_v14 = vadd.f32 %v1387_v10, %v1640_v56  ;;  %v496_v15 = vpop.f32.mrb[3].mxu1 }
  0xef   : > { %v588_v11 = vpack.c.bf16 %v557_v5, %v556_v4  ;;  %v1374_v12 = vpop.f32.mrb[4].mxu0  ;;  %v572_v18 = vmax.f32 %v494_v9, 0.0  ;;  %v497_v19 = vadd.f32 %v1640_v56, %v496_v15 }
  0xf0   : > { %v454_v16 = vadd.f32 %v1374_v12, %v1640_v56  ;;  %v445_v17 = vpop.f32.mrb[5].mxu0  ;;  %v575_v22 = vmax.f32 %v505_v14, 0.0 }
  0xf1   : > { %v446_v20 = vadd.f32 %v1640_v56, %v445_v17  ;;  %v1375_v21 = vpop.f32.mrb[6].mxu0  ;;  %1408 = vmatprep.mubr.msk.bf16.mxu1 %vm643_vm1, %v588_v11  ;;  %v573_v25 = vmax.f32 %v497_v19, 0.0 }
  0xf2   : > { %v457_v23 = vadd.f32 %v1375_v21, %v1640_v56  ;;  %v448_v24 = vpop.f32.mrb[7].mxu0  ;;  %1409 = vmatmul.mubr.msk.bf16.vlgmr.msra.gmra.mrb[16].mxu1 %vm643_vm1, %v589_v8  ;;  %v1656_v27 = vpack.c.bf16 %v575_v22, %v574_v13  ;;  %v562_v28 = vmax.f32 %v454_v16, 0.0 }
  0xf3   : > { %v449_v26 = vadd.f32 %v1640_v56, %v448_v24  ;;  %v1658_v30 = vpack.c.bf16 %v573_v25, %v572_v18  ;;  %v1390_v31 = vpop.f32.mrb[4].mxu1  ;;  %v560_v32 = vmax.f32 %v446_v20, 0.0 }
  0xf4   : > { %v563_v29 = vmax.f32 %v457_v23, 0.0  ;;  %v518_v34 = vadd.f32 %v1390_v31, %v1640_v56  ;;  %v509_v35 = vpop.f32.mrb[5].mxu1 }
  0xf5   : > { %v561_v33 = vmax.f32 %v449_v26, 0.0  ;;  %v510_v37 = vadd.f32 %v1640_v56, %v509_v35  ;;  %v1391_v38 = vpop.f32.mrb[6].mxu1 }
  0xf6   : > { %v591_v36 = vpack.c.bf16 %v563_v29, %v562_v28  ;;  %v578_v41 = vmax.f32 %v518_v34, 0.0  ;;  %v521_v42 = vadd.f32 %v1391_v38, %v1640_v56  ;;  %v512_v43 = vpop.f32.mrb[7].mxu1 }
  0xf7   : > { %v590_v39 = vpack.c.bf16 %v561_v33, %v560_v32  ;;  %v1378_v40 = vpop.f32.mrb[8].mxu0  ;;  %v576_v46 = vmax.f32 %v510_v37, 0.0  ;;  %v513_v47 = vadd.f32 %v1640_v56, %v512_v43 }
  0xf8   : > { %v470_v44 = vadd.f32 %v1378_v40, %v1640_v56  ;;  %v461_v45 = vpop.f32.mrb[9].mxu0  ;;  %v579_v50 = vmax.f32 %v521_v42, 0.0 }
  0xf9   : > { %v462_v48 = vadd.f32 %v1640_v56, %v461_v45  ;;  %v1379_v49 = vpop.f32.mrb[10].mxu0  ;;  %1412 = vmatprep.mubr.msk.bf16.mxu1 %vm643_vm1, %v590_v39  ;;  %v577_v53 = vmax.f32 %v513_v47, 0.0 }
  0xfa   : > { %v473_v51 = vadd.f32 %v1379_v49, %v1640_v56  ;;  %v464_v52 = vpop.f32.mrb[11].mxu0  ;;  %1413 = vmatmul.mubr.msk.bf16.gmra.mrb[20].mxu1 %vm643_vm1, %v591_v36  ;;  %v599_v55 = vpack.c.bf16 %v579_v50, %v578_v41  ;;  %v566_v57 = vmax.f32 %v470_v44, 0.0 }
  0xfb   : > { %v465_v54 = vadd.f32 %v1640_v56, %v464_v52  ;;  %v598_v59 = vpack.c.bf16 %v577_v53, %v576_v46  ;;  %v1394_v60 = vpop.f32.mrb[8].mxu1  ;;  %v564_v61 = vmax.f32 %v462_v48, 0.0 }
  0xfc   : > { %v567_v58 = vmax.f32 %v473_v51, 0.0  ;;  %v534_v63 = vadd.f32 %v1394_v60, %v1640_v56  ;;  %v525_v0 = vpop.f32.mrb[9].mxu1 }
  0xfd   : > { %v565_v62 = vmax.f32 %v465_v54, 0.0  ;;  %v526_v2 = vadd.f32 %v1640_v56, %v525_v0  ;;  %v1395_v3 = vpop.f32.mrb[10].mxu1 }
  0xfe   : > { %v593_v1 = vpack.c.bf16 %v567_v58, %v566_v57  ;;  %v582_v6 = vmax.f32 %v534_v63, 0.0  ;;  %v537_v7 = vadd.f32 %v1395_v3, %v1640_v56  ;;  %v528_v8 = vpop.f32.mrb[11].mxu1 }
  0xff   : > { %v592_v4 = vpack.c.bf16 %v565_v62, %v564_v61  ;;  %v1382_v5 = vpop.f32.mrb[12].mxu0  ;;  %v580_v11 = vmax.f32 %v526_v2, 0.0  ;;  %v529_v12 = vadd.f32 %v1640_v56, %v528_v8 }
 0x100   : > { %v486_v9 = vadd.f32 %v1382_v5, %v1640_v56  ;;  %v477_v10 = vpop.f32.mrb[13].mxu0  ;;  %v583_v15 = vmax.f32 %v537_v7, 0.0 }
 0x101   : > { %v478_v13 = vadd.f32 %v1640_v56, %v477_v10  ;;  %v1383_v14 = vpop.f32.mrb[14].mxu0  ;;  %1416 = vmatprep.mubr.msk.bf16.mxu1 %vm643_vm1, %v592_v4  ;;  %v581_v18 = vmax.f32 %v529_v12, 0.0 }
 0x102   : > { %v489_v16 = vadd.f32 %v1383_v14, %v1640_v56  ;;  %v480_v17 = vpop.f32.mrb[15].mxu0  ;;  %1417 = vmatmul.mubr.msk.bf16.gmra.mrb[24].mxu1 %vm643_vm1, %v593_v1  ;;  %v601_v20 = vpack.c.bf16 %v583_v15, %v582_v6  ;;  %v570_v21 = vmax.f32 %v486_v9, 0.0 }
 0x103   : > { %v481_v19 = vadd.f32 %v1640_v56, %v480_v17  ;;  %v600_v23 = vpack.c.bf16 %v581_v18, %v580_v11  ;;  %v1398_v24 = vpop.f32.mrb[12].mxu1  ;;  %v568_v25 = vmax.f32 %v478_v13, 0.0 }
 0x104   : > { %v571_v22 = vmax.f32 %v489_v16, 0.0  ;;  %v550_v28 = vadd.f32 %v1398_v24, %v1640_v56  ;;  %v541_v29 = vpop.f32.mrb[13].mxu1 }
 0x105   : > { %v569_v26 = vmax.f32 %v481_v19, 0.0  ;;  %v542_v32 = vadd.f32 %v1640_v56, %v541_v29  ;;  %v1399_v33 = vpop.f32.mrb[14].mxu1 }
 0x106   : > { %v595_v31 = vpack.c.bf16 %v571_v22, %v570_v21  ;;  %v586_v35 = vmax.f32 %v550_v28, 0.0  ;;  %v553_v36 = vadd.f32 %v1399_v33, %v1640_v56  ;;  %v544_v37 = vpop.f32.mrb[15].mxu1 }
 0x107   : > { %v594_v34 = vpack.c.bf16 %v569_v26, %v568_v25  ;;  %v584_v38 = vmax.f32 %v542_v32, 0.0  ;;  %v545_v39 = vadd.f32 %v1640_v56, %v544_v37  ;;  %v1498_v56 = vld [vmem:[%s1868_s5 + $0x18] sm:$0xff]  }
 0x108   : > { %v587_v40 = vmax.f32 %v553_v36, 0.0  ;;  %1446 = vmatprep.subr.bf16.mxu0 %v1498_v56 }
 0x109   : > { %1420 = vmatprep.mubr.msk.bf16.mxu1 %vm643_vm1, %v594_v34  ;;  %v585_v41 = vmax.f32 %v545_v39, 0.0  ;;  %1447 = vmatpush3.bf16.msra.mxu0 %v1498_v56 }
 0x10a   : > { %1421 = vmatmul.mubr.msk.bf16.gmra.mrb[28].mxu1 %vm643_vm1, %v595_v31  ;;  %v603_v42 = vpack.c.bf16 %v587_v40, %v586_v35 }
 0x10b   : > { %1424 = vmatprep.mubr.msk.bf16.mxu1 %vm643_vm1, %v1658_v30  ;;  %v602_v43 = vpack.c.bf16 %v585_v41, %v584_v38 }
 0x112   : > { %1425 = vmatmul.mubr.msk.bf16.gmra.mrb[32].mxu1 %vm643_vm1, %v1656_v27  ;;  %v1702_v27 = vld [vmem:[%s1867_s4] ss:$0 sm:$0xff] }
 0x113   : > { %1428 = vmatprep.mubr.msk.bf16.mxu1 %vm643_vm1, %v598_v59 }
 0x11a   : > { %1429 = vmatmul.mubr.msk.bf16.gmra.mrb[36].mxu1 %vm643_vm1, %v599_v55 }
 0x11b   : > { %1432 = vmatprep.mubr.msk.bf16.mxu1 %vm643_vm1, %v600_v23 }
 0x122   : > { %1433 = vmatmul.mubr.msk.bf16.gmra.mrb[40].mxu1 %vm643_vm1, %v601_v20 }
 0x123   : > { %1436 = vmatprep.mubr.msk.bf16.mxu1 %vm643_vm1, %v602_v43 }
 0x12a   : > { %1437 = vmatmul.mubr.msk.bf16.gmra.mrb[44].mxu1 %vm643_vm1, %v603_v42 }
 0x1c5   : > { %v1410_v30 = vpop.f32.mrb[16].mxu1 }
 0x1c6   : > { %v735_v44 = vadd.f32 %v1410_v30, %v1702_v27  ;;  %v726_v45 = vpop.f32.mrb[17].mxu1 }
 0x1c7   : > { %v727_v46 = vadd.f32 %v1702_v27, %v726_v45  ;;  %v1411_v47 = vpop.f32.mrb[18].mxu1 }
 0x1c8   : > { %v738_v48 = vadd.f32 %v1411_v47, %v1702_v27  ;;  %v729_v49 = vpop.f32.mrb[19].mxu1  ;;  %v855_v51 = vmax.f32 %v735_v44, 0.0 }
 0x1c9   : > { %v730_v50 = vadd.f32 %v1702_v27, %v729_v49  ;;  %v853_v53 = vmax.f32 %v727_v46, 0.0 }
 0x1ca   : > { %v856_v52 = vmax.f32 %v738_v48, 0.0 }
 0x1cb   : > { %v854_v54 = vmax.f32 %v730_v50, 0.0 }
 0x1cc   : > { %v886_v55 = vpack.c.bf16 %v856_v52, %v855_v51 }
 0x1cd   : > { %v885_v57 = vpack.c.bf16 %v854_v54, %v853_v53  ;;  %v1414_v58 = vpop.f32.mrb[20].mxu1 }
 0x1ce   : > { %v751_v59 = vadd.f32 %v1414_v58, %v1702_v27  ;;  %v742_v60 = vpop.f32.mrb[21].mxu1 }
 0x1cf   : > { %v743_v61 = vadd.f32 %v1702_v27, %v742_v60  ;;  %v1415_v62 = vpop.f32.mrb[22].mxu1  ;;  %1448 = vmatprep.mubr.msk.bf16.mxu0 %vm643_vm1, %v885_v57 }
 0x1d0   : > { %v754_v63 = vadd.f32 %v1415_v62, %v1702_v27  ;;  %v745_v0 = vpop.f32.mrb[23].mxu1  ;;  %1449 = vmatmul.mubr.msk.bf16.vlgmr.msra.gmra.mrb[16].mxu0 %vm643_vm1, %v886_v55  ;;  %v859_v2 = vmax.f32 %v751_v59, 0.0 }
 0x1d1   : > { %v746_v1 = vadd.f32 %v1702_v27, %v745_v0  ;;  %v857_v4 = vmax.f32 %v743_v61, 0.0 }
 0x1d2   : > { %v860_v3 = vmax.f32 %v754_v63, 0.0 }
 0x1d3   : > { %v858_v5 = vmax.f32 %v746_v1, 0.0 }
 0x1d4   : > { %v888_v6 = vpack.c.bf16 %v860_v3, %v859_v2 }
 0x1d5   : > { %v887_v7 = vpack.c.bf16 %v858_v5, %v857_v4  ;;  %v1418_v8 = vpop.f32.mrb[24].mxu1 }
 0x1d6   : > { %v767_v9 = vadd.f32 %v1418_v8, %v1702_v27  ;;  %v758_v10 = vpop.f32.mrb[25].mxu1 }
 0x1d7   : > { %v759_v11 = vadd.f32 %v1702_v27, %v758_v10  ;;  %v1419_v12 = vpop.f32.mrb[26].mxu1  ;;  %1452 = vmatprep.mubr.msk.bf16.mxu0 %vm643_vm1, %v887_v7 }
 0x1d8   : > { %v770_v13 = vadd.f32 %v1419_v12, %v1702_v27  ;;  %v761_v14 = vpop.f32.mrb[27].mxu1  ;;  %1453 = vmatmul.mubr.msk.bf16.gmra.mrb[20].mxu0 %vm643_vm1, %v888_v6  ;;  %v863_v16 = vmax.f32 %v767_v9, 0.0 }
 0x1d9   : > { %v762_v15 = vadd.f32 %v1702_v27, %v761_v14  ;;  %v861_v18 = vmax.f32 %v759_v11, 0.0 }
 0x1da   : > { %v864_v17 = vmax.f32 %v770_v13, 0.0 }
 0x1db   : > { %v862_v19 = vmax.f32 %v762_v15, 0.0 }
 0x1dc   : > { %v890_v20 = vpack.c.bf16 %v864_v17, %v863_v16 }
 0x1dd   : > { %v889_v21 = vpack.c.bf16 %v862_v19, %v861_v18  ;;  %v1422_v22 = vpop.f32.mrb[28].mxu1 }
 0x1de   : > { %v783_v23 = vadd.f32 %v1422_v22, %v1702_v27  ;;  %v774_v24 = vpop.f32.mrb[29].mxu1 }
 0x1df   : > { %v775_v25 = vadd.f32 %v1702_v27, %v774_v24  ;;  %v1423_v26 = vpop.f32.mrb[30].mxu1  ;;  %1456 = vmatprep.mubr.msk.bf16.mxu0 %vm643_vm1, %v889_v21 }
 0x1e0   : > { %v786_v28 = vadd.f32 %v1423_v26, %v1702_v27  ;;  %v777_v29 = vpop.f32.mrb[31].mxu1  ;;  %1457 = vmatmul.mubr.msk.bf16.gmra.mrb[24].mxu0 %vm643_vm1, %v890_v20  ;;  %v867_v32 = vmax.f32 %v783_v23, 0.0 }
 0x1e1   : > { %v778_v31 = vadd.f32 %v1702_v27, %v777_v29  ;;  %v865_v34 = vmax.f32 %v775_v25, 0.0 }
 0x1e2   : > { %v868_v33 = vmax.f32 %v786_v28, 0.0 }
 0x1e3   : > { %v866_v35 = vmax.f32 %v778_v31, 0.0  ;;  %v1755_v31 = vld [vmem:[%s1869_s6] ss:$0 sm:$0xff] }
 0x1e4   : > { %v892_v36 = vpack.c.bf16 %v868_v33, %v867_v32 }
 0x1e5   : > { %v891_v37 = vpack.c.bf16 %v866_v35, %v865_v34  ;;  %v1426_v38 = vpop.f32.mrb[32].mxu1 }
 0x1e6   : > { %v799_v39 = vadd.f32 %v1426_v38, %v1702_v27  ;;  %v790_v40 = vpop.f32.mrb[33].mxu1 }
 0x1e7   : > { %v791_v41 = vadd.f32 %v1702_v27, %v790_v40  ;;  %v1427_v42 = vpop.f32.mrb[34].mxu1  ;;  %1460 = vmatprep.mubr.msk.bf16.mxu0 %vm643_vm1, %v891_v37 }
 0x1e8   : > { %v802_v43 = vadd.f32 %v1427_v42, %v1702_v27  ;;  %v793_v56 = vpop.f32.mrb[35].mxu1  ;;  %1461 = vmatmul.mubr.msk.bf16.gmra.mrb[28].mxu0 %vm643_vm1, %v892_v36  ;;  %v871_v44 = vmax.f32 %v799_v39, 0.0 }
 0x1e9   : > { %v794_v30 = vadd.f32 %v1702_v27, %v793_v56  ;;  %v869_v46 = vmax.f32 %v791_v41, 0.0 }
 0x1ea   : > { %v872_v45 = vmax.f32 %v802_v43, 0.0 }
 0x1eb   : > { %v870_v47 = vmax.f32 %v794_v30, 0.0 }
 0x1ec   : > { %v894_v48 = vpack.c.bf16 %v872_v45, %v871_v44 }
 0x1ed   : > { %v893_v49 = vpack.c.bf16 %v870_v47, %v869_v46  ;;  %v1430_v50 = vpop.f32.mrb[36].mxu1 }
 0x1ee   : > { %v815_v51 = vadd.f32 %v1430_v50, %v1702_v27  ;;  %v806_v52 = vpop.f32.mrb[37].mxu1 }
 0x1ef   : > { %v807_v53 = vadd.f32 %v1702_v27, %v806_v52  ;;  %v1431_v54 = vpop.f32.mrb[38].mxu1  ;;  %1464 = vmatprep.mubr.msk.bf16.mxu0 %vm643_vm1, %v893_v49 }
 0x1f0   : > { %v818_v55 = vadd.f32 %v1431_v54, %v1702_v27  ;;  %v809_v57 = vpop.f32.mrb[39].mxu1  ;;  %1465 = vmatmul.mubr.msk.bf16.gmra.mrb[32].mxu0 %vm643_vm1, %v894_v48  ;;  %v875_v59 = vmax.f32 %v815_v51, 0.0 }
 0x1f1   : > { %v810_v58 = vadd.f32 %v1702_v27, %v809_v57  ;;  %v873_v61 = vmax.f32 %v807_v53, 0.0 }
 0x1f2   : > { %v876_v60 = vmax.f32 %v818_v55, 0.0 }
 0x1f3   : > { %v874_v62 = vmax.f32 %v810_v58, 0.0 }
 0x1f4   : > { %v896_v63 = vpack.c.bf16 %v876_v60, %v875_v59 }
 0x1f5   : > { %v895_v0 = vpack.c.bf16 %v874_v62, %v873_v61  ;;  %v1434_v1 = vpop.f32.mrb[40].mxu1 }
 0x1f6   : > { %v831_v2 = vadd.f32 %v1434_v1, %v1702_v27  ;;  %v822_v3 = vpop.f32.mrb[41].mxu1 }
 0x1f7   : > { %v823_v4 = vadd.f32 %v1702_v27, %v822_v3  ;;  %v1435_v5 = vpop.f32.mrb[42].mxu1  ;;  %1468 = vmatprep.mubr.msk.bf16.mxu0 %vm643_vm1, %v895_v0 }
 0x1f8   : > { %v834_v6 = vadd.f32 %v1435_v5, %v1702_v27  ;;  %v825_v7 = vpop.f32.mrb[43].mxu1  ;;  %1469 = vmatmul.mubr.msk.bf16.gmra.mrb[36].mxu0 %vm643_vm1, %v896_v63  ;;  %v879_v9 = vmax.f32 %v831_v2, 0.0 }
 0x1f9   : > { %v826_v8 = vadd.f32 %v1702_v27, %v825_v7  ;;  %v877_v11 = vmax.f32 %v823_v4, 0.0 }
 0x1fa   : > { %v880_v10 = vmax.f32 %v834_v6, 0.0 }
 0x1fb   : > { %v878_v12 = vmax.f32 %v826_v8, 0.0 }
 0x1fc   : > { %v898_v13 = vpack.c.bf16 %v880_v10, %v879_v9 }
 0x1fd   : > { %v897_v14 = vpack.c.bf16 %v878_v12, %v877_v11  ;;  %v1438_v15 = vpop.f32.mrb[44].mxu1 }
 0x1fe   : > { %v847_v16 = vadd.f32 %v1438_v15, %v1702_v27  ;;  %v838_v17 = vpop.f32.mrb[45].mxu1 }
 0x1ff   : > { %v839_v18 = vadd.f32 %v1702_v27, %v838_v17  ;;  %v1439_v19 = vpop.f32.mrb[46].mxu1  ;;  %1472 = vmatprep.mubr.msk.bf16.mxu0 %vm643_vm1, %v897_v14 }
 0x200   : > { %v850_v20 = vadd.f32 %v1439_v19, %v1702_v27  ;;  %v841_v21 = vpop.f32.mrb[47].mxu1  ;;  %1473 = vmatmul.mubr.msk.bf16.gmra.mrb[40].mxu0 %vm643_vm1, %v898_v13  ;;  %v883_v23 = vmax.f32 %v847_v16, 0.0 }
 0x201   : > { %v842_v22 = vadd.f32 %v1702_v27, %v841_v21  ;;  %v881_v25 = vmax.f32 %v839_v18, 0.0 }
 0x202   : > { %v884_v24 = vmax.f32 %v850_v20, 0.0 }
 0x203   : > { %v882_v26 = vmax.f32 %v842_v22, 0.0 }
 0x204   : > { %v900_v28 = vpack.c.bf16 %v884_v24, %v883_v23 }
 0x205   : > { %v899_v29 = vpack.c.bf16 %v882_v26, %v881_v25 }
 0x207   : > { %1476 = vmatprep.mubr.msk.bf16.mxu0 %vm643_vm1, %v899_v29 }
 0x208   : > { %1477 = vmatmul.mubr.msk.bf16.gmra.mrb[44].mxu0 %vm643_vm1, %v900_v28 }
 0x2a3   : > { %v1450_v27 = vpop.f32.mrb[16].mxu0 }
 0x2a4   : > { %v1031_v32 = vadd.f32 %v1450_v27, %v1755_v31  ;;  %v1022_v33 = vpop.f32.mrb[17].mxu0 }
 0x2a5   : > { %v1023_v34 = vadd.f32 %v1755_v31, %v1022_v33  ;;  %v1451_v35 = vpop.f32.mrb[18].mxu0 }
 0x2a6   : > { %1152 = vst.msk [vmem:[%s1762_s14 + $0x10] sm:$0xff] %vm1149_vm2, %v1031_v32  ;;  %v1034_v36 = vadd.f32 %v1451_v35, %v1755_v31  ;;  %v1025_v37 = vpop.f32.mrb[19].mxu0 }
 0x2a7   : > { %1150 = vst.msk [vmem:[%s1762_s14] sm:$0xff] %vm1149_vm2, %v1023_v34  ;;  %v1026_v38 = vadd.f32 %v1755_v31, %v1025_v37 }
 0x2a8   : > { %1153 = vst.msk [vmem:[%s1762_s14 + $0x18] sm:$0xff] %vm1149_vm2, %v1034_v36 }
 0x2a9   : > { %1151 = vst.msk [vmem:[%s1762_s14 + $0x8] sm:$0xff] %vm1149_vm2, %v1026_v38 }
 0x2ab   : > { %v1454_v39 = vpop.f32.mrb[20].mxu0 }
 0x2ac   : > { %v1047_v40 = vadd.f32 %v1454_v39, %v1755_v31  ;;  %v1038_v41 = vpop.f32.mrb[21].mxu0 }
 0x2ad   : > { %v1039_v42 = vadd.f32 %v1755_v31, %v1038_v41  ;;  %v1455_v43 = vpop.f32.mrb[22].mxu0 }
 0x2ae   : > { %1156 = vst.msk [vmem:[%s1762_s14 + $0x30] sm:$0xff] %vm1149_vm2, %v1047_v40  ;;  %v1050_v56 = vadd.f32 %v1455_v43, %v1755_v31  ;;  %v1041_v30 = vpop.f32.mrb[23].mxu0 }
 0x2af   : > { %1154 = vst.msk [vmem:[%s1762_s14 + $0x20] sm:$0xff] %vm1149_vm2, %v1039_v42  ;;  %v1042_v44 = vadd.f32 %v1755_v31, %v1041_v30 }
 0x2b0   : > { %1157 = vst.msk [vmem:[%s1762_s14 + $0x38] sm:$0xff] %vm1149_vm2, %v1050_v56 }
 0x2b1   : > { %1155 = vst.msk [vmem:[%s1762_s14 + $0x28] sm:$0xff] %vm1149_vm2, %v1042_v44 }
 0x2b3   : > { %v1458_v45 = vpop.f32.mrb[24].mxu0 }
 0x2b4   : > { %v1063_v46 = vadd.f32 %v1458_v45, %v1755_v31  ;;  %v1054_v47 = vpop.f32.mrb[25].mxu0 }
 0x2b5   : > { %v1055_v48 = vadd.f32 %v1755_v31, %v1054_v47  ;;  %v1459_v49 = vpop.f32.mrb[26].mxu0 }
 0x2b6   : > { %1160 = vst.msk [vmem:[%s1762_s14 + $0x50] sm:$0xff] %vm1149_vm2, %v1063_v46  ;;  %v1066_v50 = vadd.f32 %v1459_v49, %v1755_v31  ;;  %v1057_v51 = vpop.f32.mrb[27].mxu0 }
 0x2b7   : > { %1158 = vst.msk [vmem:[%s1762_s14 + $0x40] sm:$0xff] %vm1149_vm2, %v1055_v48  ;;  %v1058_v52 = vadd.f32 %v1755_v31, %v1057_v51 }
 0x2b8   : > { %1161 = vst.msk [vmem:[%s1762_s14 + $0x58] sm:$0xff] %vm1149_vm2, %v1066_v50 }
 0x2b9   : > { %1159 = vst.msk [vmem:[%s1762_s14 + $0x48] sm:$0xff] %vm1149_vm2, %v1058_v52 }
 0x2bb   : > { %v1462_v53 = vpop.f32.mrb[28].mxu0 }
 0x2bc   : > { %v1079_v54 = vadd.f32 %v1462_v53, %v1755_v31  ;;  %v1070_v55 = vpop.f32.mrb[29].mxu0 }
 0x2bd   : > { %v1071_v57 = vadd.f32 %v1755_v31, %v1070_v55  ;;  %v1463_v58 = vpop.f32.mrb[30].mxu0 }
 0x2be   : > { %1164 = vst.msk [vmem:[%s1762_s14 + $0x70] sm:$0xff] %vm1149_vm2, %v1079_v54  ;;  %v1082_v59 = vadd.f32 %v1463_v58, %v1755_v31  ;;  %v1073_v60 = vpop.f32.mrb[31].mxu0 }
 0x2bf   : > { %1162 = vst.msk [vmem:[%s1762_s14 + $0x60] sm:$0xff] %vm1149_vm2, %v1071_v57  ;;  %v1074_v61 = vadd.f32 %v1755_v31, %v1073_v60 }
 0x2c0   : > { %1165 = vst.msk [vmem:[%s1762_s14 + $0x78] sm:$0xff] %vm1149_vm2, %v1082_v59 }
 0x2c1   : > { %1163 = vst.msk [vmem:[%s1762_s14 + $0x68] sm:$0xff] %vm1149_vm2, %v1074_v61 }
 0x2c3   : > { %v1466_v62 = vpop.f32.mrb[32].mxu0 }
 0x2c4   : > { %v1095_v63 = vadd.f32 %v1466_v62, %v1755_v31  ;;  %v1086_v0 = vpop.f32.mrb[33].mxu0 }
 0x2c5   : > { %v1087_v1 = vadd.f32 %v1755_v31, %v1086_v0  ;;  %v1467_v2 = vpop.f32.mrb[34].mxu0 }
 0x2c6   : > { %1168 = vst.msk [vmem:[%s1762_s14 + $0x90] sm:$0xff] %vm1149_vm2, %v1095_v63  ;;  %v1098_v3 = vadd.f32 %v1467_v2, %v1755_v31  ;;  %v1089_v4 = vpop.f32.mrb[35].mxu0 }
 0x2c7   : > { %1166 = vst.msk [vmem:[%s1762_s14 + $0x80] sm:$0xff] %vm1149_vm2, %v1087_v1  ;;  %v1090_v5 = vadd.f32 %v1755_v31, %v1089_v4 }
 0x2c8   : > { %1169 = vst.msk [vmem:[%s1762_s14 + $0x98] sm:$0xff] %vm1149_vm2, %v1098_v3 }
 0x2c9   : > { %1167 = vst.msk [vmem:[%s1762_s14 + $0x88] sm:$0xff] %vm1149_vm2, %v1090_v5 }
 0x2cb   : > { %v1470_v6 = vpop.f32.mrb[36].mxu0 }
 0x2cc   : > { %v1111_v7 = vadd.f32 %v1470_v6, %v1755_v31  ;;  %v1102_v8 = vpop.f32.mrb[37].mxu0 }
 0x2cd   : > { %v1103_v9 = vadd.f32 %v1755_v31, %v1102_v8  ;;  %v1471_v10 = vpop.f32.mrb[38].mxu0 }
 0x2ce   : > { %1172 = vst.msk [vmem:[%s1762_s14 + $0xb0] sm:$0xff] %vm1149_vm2, %v1111_v7  ;;  %v1114_v11 = vadd.f32 %v1471_v10, %v1755_v31  ;;  %v1105_v12 = vpop.f32.mrb[39].mxu0 }
 0x2cf   : > { %1170 = vst.msk [vmem:[%s1762_s14 + $0xa0] sm:$0xff] %vm1149_vm2, %v1103_v9  ;;  %v1106_v13 = vadd.f32 %v1755_v31, %v1105_v12 }
 0x2d0   : > { %1173 = vst.msk [vmem:[%s1762_s14 + $0xb8] sm:$0xff] %vm1149_vm2, %v1114_v11 }
 0x2d1   : > { %1171 = vst.msk [vmem:[%s1762_s14 + $0xa8] sm:$0xff] %vm1149_vm2, %v1106_v13 }
 0x2d3   : > { %v1474_v14 = vpop.f32.mrb[40].mxu0 }
 0x2d4   : > { %v1127_v15 = vadd.f32 %v1474_v14, %v1755_v31  ;;  %v1118_v16 = vpop.f32.mrb[41].mxu0 }
 0x2d5   : > { %v1119_v17 = vadd.f32 %v1755_v31, %v1118_v16  ;;  %v1475_v18 = vpop.f32.mrb[42].mxu0 }
 0x2d6   : > { %1176 = vst.msk [vmem:[%s1762_s14 + $0xd0] sm:$0xff] %vm1149_vm2, %v1127_v15  ;;  %v1130_v19 = vadd.f32 %v1475_v18, %v1755_v31  ;;  %v1121_v20 = vpop.f32.mrb[43].mxu0 }
 0x2d7   : > { %1174 = vst.msk [vmem:[%s1762_s14 + $0xc0] sm:$0xff] %vm1149_vm2, %v1119_v17  ;;  %v1122_v21 = vadd.f32 %v1755_v31, %v1121_v20 }
 0x2d8   : > { %1177 = vst.msk [vmem:[%s1762_s14 + $0xd8] sm:$0xff] %vm1149_vm2, %v1130_v19 }
 0x2d9   : > { %1175 = vst.msk [vmem:[%s1762_s14 + $0xc8] sm:$0xff] %vm1149_vm2, %v1122_v21 }
 0x2db   : > { %v1478_v22 = vpop.f32.mrb[44].mxu0 }
 0x2dc   : > { %v1143_v23 = vadd.f32 %v1478_v22, %v1755_v31  ;;  %v1134_v24 = vpop.f32.mrb[45].mxu0 }
 0x2dd   : > { %v1135_v25 = vadd.f32 %v1755_v31, %v1134_v24  ;;  %v1479_v26 = vpop.f32.mrb[46].mxu0 }
 0x2de   : > { %1180 = vst.msk [vmem:[%s1762_s14 + $0xf0] sm:$0xff] %vm1149_vm2, %v1143_v23  ;;  %v1146_v28 = vadd.f32 %v1479_v26, %v1755_v31  ;;  %v1137_v29 = vpop.f32.mrb[47].mxu0 }
 0x2df   : > { %1178 = vst.msk [vmem:[%s1762_s14 + $0xe0] sm:$0xff] %vm1149_vm2, %v1135_v25  ;;  %v1138_v27 = vadd.f32 %v1755_v31, %v1137_v29 }
 0x2e0   : > { %1181 = vst.msk [vmem:[%s1762_s14 + $0xf8] sm:$0xff] %vm1149_vm2, %v1146_v28 }
 0x2e1   : > { %1179 = vst.msk [vmem:[%s1762_s14 + $0xe8] sm:$0xff] %vm1149_vm2, %v1138_v27 }
 0x2e2 PF: > { %s17_s24 = sadd.s32 1, %s1505_s24  }
 0x2e3   : > { %p14_p4 = scmp.ge.s32.totalorder %s17_s24, 4  }
 0x2e5   :  { %16 = sbr.rel (!%p14_p4) target bundleno = 1 (0x1), region = 78 }

</bundles_post_ra>
